<compile_context>
chip_gen: v7x
topology: tpu7x:2x2x1
jax: 0.10.0
libtpu: 0.0.40
codegen_flags: <defaults>
</compile_context>

<pallas_src>
import functools

import jax
import jax.numpy as jnp
from jax.experimental import pallas as pl
from jax.experimental.pallas import tpu as pltpu


# -----------------------------------------------------------------------------
# Fused Pallas kernel: banded conv (3 matmuls) + bias + ReLU + GAP + probe
# -----------------------------------------------------------------------------
def _fused_backbone_kernel(x_ref, band_ref, bc_ref, wp_ref, bp_ref, o_ref, *, H, KH):
    # x_ref   : (B_TILE, H+KH-1, Wp*C_in)   bf16 lane-dense padded images
    # band_ref: (KH, Wp*C_in, W*C_mid)      bf16 banded conv weights (one per kernel row)
    # bc_ref  : (1, W*C_mid)                f32 conv bias, tiled along W
    # wp_ref  : (W*C_mid, C_out)            f32 probe weight tiled along W, scaled by 1/(H*W)
    # bp_ref  : (1, C_out)                  f32 probe bias
    # o_ref   : (1, B_TILE, C_out)          f32 logits for this batch tile
    B = x_ref.shape[0]
    k_lane = x_ref.shape[-1]          # Wp * C_in   (72)
    n_lane = band_ref.shape[-1]       # W  * C_mid  (512)

    # Conv: 3 dense bf16 matmuls (one per kernel row di), f32 accumulation on the MXU.
    acc = jnp.zeros((B * H, n_lane), jnp.float32)
    for di in range(KH):
        xs = x_ref[:, di:di + H, :].reshape(B * H, k_lane)          # (B*H, 72) bf16
        acc = acc + jnp.dot(xs, band_ref[di],
                            preferred_element_type=jnp.float32)     # (B*H, 512) f32

    # Bias + ReLU in f32 (v5e has no bf16 VPU/EUP).
    y = jnp.maximum(acc + bc_ref[...], 0.0)                         # (B*H, W*C_mid)

    # Sum over H (per image), then fold the W-average + linear probe into one tiny
    # f32 matmul: GAP-then-Linear == sum_H @ (tile(W_probe)/(H*W)) + bias.
    s = jnp.sum(y.reshape(B, H, n_lane), axis=1)                    # (B, W*C_mid)
    logits = jnp.dot(s, wp_ref[...],
                     preferred_element_type=jnp.float32) + bp_ref[...]   # (B, C_out)
    o_ref[0] = logits.astype(o_ref.dtype)


# -----------------------------------------------------------------------------
# VisionBackbone: conv stem -> ReLU -> GAP -> linear probe
# -----------------------------------------------------------------------------
class VisionBackbone:
    def __init__(self, in_channels=4, mid_channels=32, out_features=8,
                 kernel_size=3, stride=1, padding=1, seed=0):
        assert stride == 1, "concrete instantiation uses stride=1"
        self.in_channels = in_channels
        self.mid_channels = mid_channels
        self.out_features = out_features
        self.kernel_size = kernel_size
        self.stride = stride
        self.padding = padding

        key = jax.random.PRNGKey(seed)
        k1, k2, k3, k4 = jax.random.split(key, 4)
        kh = kw = kernel_size
        fan_in_conv = in_channels * kh * kw

        # Conv weight in torch layout [C_mid, C_in, kh, kw] -> per-tap [kh, kw, C_in, C_mid].
        w_conv = jax.random.normal(k1, (mid_channels, in_channels, kh, kw),
                                   jnp.float32) * (1.0 / jnp.sqrt(fan_in_conv))
        self.w_taps = jnp.transpose(w_conv, (2, 3, 1, 0))       # (kh, kw, C_in, C_mid) f32
        self.b_conv = jax.random.normal(k2, (1, mid_channels), jnp.float32) * 0.01

        # Probe linear: torch layout [out_features, C_mid] -> [C_mid, out_features].
        w_probe = jax.random.normal(k3, (out_features, mid_channels),
                                    jnp.float32) * (1.0 / jnp.sqrt(mid_channels))
        self.w_probe = w_probe.T
        self.b_probe = jax.random.normal(k4, (1, out_features), jnp.float32) * 0.01

    @functools.partial(jax.jit, static_argnums=0)
    def __call__(self, x):
        # x: [N, C_in, H, W] (NCHW, matches PyTorch)
        n, c_in, h, w = x.shape
        kh = kw = self.kernel_size
        pad = self.padding
        hp, wpd = h + 2 * pad, w + 2 * pad
        ho, wo = hp - kh + 1, wpd - kw + 1              # output spatial size (== h, w here)
        c_mid, c_out = self.mid_channels, self.out_features
        k_lane = wpd * c_in                             # lane-dense input width (72)
        n_lane = wo * c_mid                             # conv-output lane width (512)

        # ---- Batch tiling: >=2 grid steps when N>=2 (v7x megacore), tile capped at 64
        #      so the per-step footprint stays well under default scoped VMEM on all gens.
        b_tile = max(1, min(64, -(-n // 2)))
        n_blocks = -(-n // b_tile)
        n_pad_b = n_blocks * b_tile

        # ---- Lane-dense padded input: one fused XLA pass (transpose + pad + cast + pack).
        xh = jnp.transpose(x, (0, 2, 3, 1))                                   # NHWC
        xp = jnp.pad(xh, ((0, n_pad_b - n), (pad, pad), (pad, pad), (0, 0)))  # spatial + batch pad
        xp = xp.astype(jnp.bfloat16).reshape(n_pad_b, hp, k_lane)             # (N', Hp, Wp*C_in)

        # ---- Banded conv weights: Band[di, wp*C_in + c, w*C_mid + m] = W[di, wp-w, c, m]
        #      (zero outside the 3-tap band).  Built once; ~220KB bf16, VMEM-resident.
        band = jnp.zeros((kh, wpd, c_in, wo, c_mid), jnp.float32)
        for dj in range(kw):
            shift = jnp.zeros((wpd, wo), jnp.float32).at[
                jnp.arange(wo) + dj, jnp.arange(wo)].set(1.0)
            band = band + (shift[None, :, None, :, None] *
                           self.w_taps[:, dj][:, None, :, None, :])
        band = band.reshape(kh, k_lane, n_lane).astype(jnp.bfloat16)

        b_conv_t = jnp.tile(self.b_conv, (1, wo))                   # (1, W*C_mid) f32
        w_probe_t = jnp.tile(self.w_probe, (wo, 1)) / (ho * wo)     # (W*C_mid, C_out) f32

        kernel = functools.partial(_fused_backbone_kernel, H=ho, KH=kh)

        out = pl.pallas_call(
            kernel,
            out_shape=jax.ShapeDtypeStruct((n_blocks, b_tile, c_out), jnp.float32),
            grid=(n_blocks,),
            in_specs=[
                pl.BlockSpec((b_tile, hp, k_lane), lambda i: (i, 0, 0)),   # batch tile
                pl.BlockSpec((kh, k_lane, n_lane), lambda i: (0, 0, 0)),   # banded conv W (resident)
                pl.BlockSpec((1, n_lane), lambda i: (0, 0)),               # conv bias (tiled)
                pl.BlockSpec((n_lane, c_out), lambda i: (0, 0)),           # probe W (tiled+scaled)
                pl.BlockSpec((1, c_out), lambda i: (0, 0)),                # probe bias
            ],
            out_specs=pl.BlockSpec((1, b_tile, c_out), lambda i: (i, 0, 0)),
            compiler_params=pltpu.CompilerParams(
                dimension_semantics=("parallel",)),    # shard batch tiles across v7x's 2 TCs
        )(xp, band, b_conv_t, w_probe_t, self.b_probe)

        return out.reshape(n_pad_b, c_out)[:n]


# -----------------------------------------------------------------------------
# Pure-JAX reference (same bf16 quantization of the MXU operands, f32 elsewhere)
# -----------------------------------------------------------------------------
def _reference(model: VisionBackbone, x):
    pad = model.padding
    kh = kw = model.kernel_size
    xh = jnp.transpose(x, (0, 2, 3, 1))
    xp = jnp.pad(xh, ((0, 0), (pad, pad), (pad, pad), (0, 0)))
    xpb = xp.astype(jnp.bfloat16).astype(jnp.float32)
    wt = model.w_taps.astype(jnp.bfloat16).astype(jnp.float32)     # (kh, kw, C_in, C_mid)
    n, hp, wpd, _ = xp.shape
    ho, wo = hp - kh + 1, wpd - kw + 1

    acc = jnp.zeros((n, ho, wo, model.mid_channels), jnp.float32)
    for di in range(kh):
        for dj in range(kw):
            acc = acc + jnp.einsum('nhwc,cm->nhwm',
                                   xpb[:, di:di + ho, dj:dj + wo, :],
                                   wt[di, dj])
    y = jnp.maximum(acc + model.b_conv.reshape(1, 1, 1, -1), 0.0)
    pooled = y.mean(axis=(1, 2))                        # GAP
    return pooled @ model.w_probe + model.b_probe       # probe


if __name__ == "__main__":
    key = jax.random.PRNGKey(0)
    x = jax.random.normal(key, (2, 4, 16, 16), jnp.float32)   # NCHW

    model = VisionBackbone(in_channels=4, mid_channels=32, out_features=8, seed=0)
    out = jax.block_until_ready(model(x))

    ref = _reference(model, x)
    assert out.shape == (2, 8), out.shape
    assert jnp.allclose(out, ref, atol=2e-3, rtol=2e-3), "mismatch vs reference"
    print("KERNEL_OK")
</pallas_src>

<mosaic_0001>
module attributes {stable_mosaic.version = 11 : i64} {
  func.func @_fused_backbone_kernel(%arg0: i32, %arg1: memref<1x18x72xbf16, #tpu.memory_space<vmem>>, %arg2: memref<3x72x512xbf16, #tpu.memory_space<vmem>>, %arg3: memref<1x512xf32, #tpu.memory_space<vmem>>, %arg4: memref<512x8xf32, #tpu.memory_space<vmem>>, %arg5: memref<1x8xf32, #tpu.memory_space<vmem>>, %arg6: memref<1x1x8xf32, #tpu.memory_space<vmem>>) attributes {dimension_semantics = [#tpu.dimension_semantics<parallel>], iteration_bounds = array<i64: 2>, scalar_prefetch = 0 : i64, scratch_operands = 0 : i64, tpu.core_type = #tpu.core_type<tc>, window_params = [{transform_indices = @transform_0, window_bounds = array<i64: 1, 18, 72>}, {pipeline_mode = #tpu.pipeline_mode<synchronous>, transform_indices = @transform_1, window_bounds = array<i64: 3, 72, 512>}, {pipeline_mode = #tpu.pipeline_mode<synchronous>, transform_indices = @transform_2, window_bounds = array<i64: 1, 512>}, {pipeline_mode = #tpu.pipeline_mode<synchronous>, transform_indices = @transform_3, window_bounds = array<i64: 512, 8>}, {pipeline_mode = #tpu.pipeline_mode<synchronous>, transform_indices = @transform_4, window_bounds = array<i64: 1, 8>}, {transform_indices = @transform_5, window_bounds = array<i64: 1, 1, 8>}]} {
    %cst = arith.constant 0.000000e+00 : f32
    %0 = vector.broadcast %cst : f32 to vector<16x512xf32>
    %c0 = arith.constant 0 : index
    %c0_0 = arith.constant 0 : index
    %c0_1 = arith.constant 0 : index
    %1 = vector.load %arg1[%c0, %c0_0, %c0_1] : memref<1x18x72xbf16, #tpu.memory_space<vmem>>, vector<1x16x72xbf16>
    %2 = vector.shape_cast %1 : vector<1x16x72xbf16> to vector<16x72xbf16>
    %c0_2 = arith.constant 0 : index
    %c0_3 = arith.constant 0 : index
    %c0_4 = arith.constant 0 : index
    %3 = vector.load %arg2[%c0_2, %c0_3, %c0_4] : memref<3x72x512xbf16, #tpu.memory_space<vmem>>, vector<1x72x512xbf16>
    %4 = vector.shape_cast %3 : vector<1x72x512xbf16> to vector<72x512xbf16>
    %cst_5 = arith.constant dense<0.000000e+00> : vector<16x512xf32>
    %5 = tpu.matmul %2, %4, %cst_5 {dimension_numbers = #tpu.dot_dimension_numbers<[1], [0], [0], [1], [0, 0, 1, 1], [], []>} : vector<16x72xbf16>, vector<72x512xbf16>, vector<16x512xf32> -> vector<16x512xf32>
    %6 = arith.addf %0, %5 : vector<16x512xf32>
    %c0_6 = arith.constant 0 : index
    %c1 = arith.constant 1 : index
    %c0_7 = arith.constant 0 : index
    %7 = vector.load %arg1[%c0_6, %c1, %c0_7] : memref<1x18x72xbf16, #tpu.memory_space<vmem>>, vector<1x16x72xbf16>
    %8 = vector.shape_cast %7 : vector<1x16x72xbf16> to vector<16x72xbf16>
    %c1_8 = arith.constant 1 : index
    %c0_9 = arith.constant 0 : index
    %c0_10 = arith.constant 0 : index
    %9 = vector.load %arg2[%c1_8, %c0_9, %c0_10] : memref<3x72x512xbf16, #tpu.memory_space<vmem>>, vector<1x72x512xbf16>
    %10 = vector.shape_cast %9 : vector<1x72x512xbf16> to vector<72x512xbf16>
    %cst_11 = arith.constant dense<0.000000e+00> : vector<16x512xf32>
    %11 = tpu.matmul %8, %10, %cst_11 {dimension_numbers = #tpu.dot_dimension_numbers<[1], [0], [0], [1], [0, 0, 1, 1], [], []>} : vector<16x72xbf16>, vector<72x512xbf16>, vector<16x512xf32> -> vector<16x512xf32>
    %12 = arith.addf %6, %11 : vector<16x512xf32>
    %c0_12 = arith.constant 0 : index
    %c2 = arith.constant 2 : index
    %c0_13 = arith.constant 0 : index
    %13 = vector.load %arg1[%c0_12, %c2, %c0_13] : memref<1x18x72xbf16, #tpu.memory_space<vmem>>, vector<1x16x72xbf16>
    %14 = vector.shape_cast %13 : vector<1x16x72xbf16> to vector<16x72xbf16>
    %c2_14 = arith.constant 2 : index
    %c0_15 = arith.constant 0 : index
    %c0_16 = arith.constant 0 : index
    %15 = vector.load %arg2[%c2_14, %c0_15, %c0_16] : memref<3x72x512xbf16, #tpu.memory_space<vmem>>, vector<1x72x512xbf16>
    %16 = vector.shape_cast %15 : vector<1x72x512xbf16> to vector<72x512xbf16>
    %cst_17 = arith.constant dense<0.000000e+00> : vector<16x512xf32>
    %17 = tpu.matmul %14, %16, %cst_17 {dimension_numbers = #tpu.dot_dimension_numbers<[1], [0], [0], [1], [0, 0, 1, 1], [], []>} : vector<16x72xbf16>, vector<72x512xbf16>, vector<16x512xf32> -> vector<16x512xf32>
    %18 = arith.addf %12, %17 : vector<16x512xf32>
    %c0_18 = arith.constant 0 : index
    %c0_19 = arith.constant 0 : index
    %19 = vector.load %arg3[%c0_18, %c0_19] : memref<1x512xf32, #tpu.memory_space<vmem>>, vector<1x512xf32>
    %20 = vector.broadcast %19 : vector<1x512xf32> to vector<16x512xf32>
    %21 = arith.addf %18, %20 : vector<16x512xf32>
    %cst_20 = arith.constant 0.000000e+00 : f32
    %22 = vector.broadcast %cst_20 : f32 to vector<16x512xf32>
    %23 = arith.maximumf %21, %22 : vector<16x512xf32>
    %24 = vector.shape_cast %23 : vector<16x512xf32> to vector<1x16x512xf32>
    %cst_21 = arith.constant dense<0.000000e+00> : vector<1x512xf32>
    %25 = vector.multi_reduction <add>, %24, %cst_21 [1] : vector<1x16x512xf32> to vector<1x512xf32>
    %c0_22 = arith.constant 0 : index
    %c0_23 = arith.constant 0 : index
    %26 = vector.load %arg4[%c0_22, %c0_23] : memref<512x8xf32, #tpu.memory_space<vmem>>, vector<512x8xf32>
    %cst_24 = arith.constant dense<0.000000e+00> : vector<1x8xf32>
    %27 = tpu.matmul %25, %26, %cst_24 {dimension_numbers = #tpu.dot_dimension_numbers<[1], [0], [0], [1], [0, 0, 1, 1], [], []>} : vector<1x512xf32>, vector<512x8xf32>, vector<1x8xf32> -> vector<1x8xf32>
    %c0_25 = arith.constant 0 : index
    %c0_26 = arith.constant 0 : index
    %28 = vector.load %arg5[%c0_25, %c0_26] : memref<1x8xf32, #tpu.memory_space<vmem>>, vector<1x8xf32>
    %29 = arith.addf %27, %28 : vector<1x8xf32>
    %c0_27 = arith.constant 0 : index
    %c0_28 = arith.constant 0 : index
    %c0_29 = arith.constant 0 : index
    %30 = vector.load %arg6[%c0_27, %c0_28, %c0_29] : memref<1x1x8xf32, #tpu.memory_space<vmem>>, vector<1x1x8xf32>
    %31 = vector.shape_cast %30 : vector<1x1x8xf32> to vector<1x8xf32>
    %32 = vector.shape_cast %29 : vector<1x8xf32> to vector<1x1x8xf32>
    tpu.vector_store %arg6[%c0_27, %c0_28, %c0_29], %32 {strides = array<i32>} : memref<1x1x8xf32, #tpu.memory_space<vmem>>, vector<1x1x8xf32>,
    return
  }
  func.func @transform_0(%arg0: i32) -> (i32, i32, i32) {
    %c0_i32 = arith.constant 0 : i32
    %c0_i32_0 = arith.constant 0 : i32
    %c0_i32_1 = arith.constant 0 : i32
    return %arg0, %c0_i32, %c0_i32_0 : i32, i32, i32
  }
  func.func @transform_1(%arg0: i32) -> (i32, i32, i32) {
    %c0_i32 = arith.constant 0 : i32
    %c0_i32_0 = arith.constant 0 : i32
    %c0_i32_1 = arith.constant 0 : i32
    %c0_i32_2 = arith.constant 0 : i32
    return %c0_i32, %c0_i32_0, %c0_i32_1 : i32, i32, i32
  }
  func.func @transform_2(%arg0: i32) -> (i32, i32) {
    %c0_i32 = arith.constant 0 : i32
    %c0_i32_0 = arith.constant 0 : i32
    %c0_i32_1 = arith.constant 0 : i32
    return %c0_i32, %c0_i32_0 : i32, i32
  }
  func.func @transform_3(%arg0: i32) -> (i32, i32) {
    %c0_i32 = arith.constant 0 : i32
    %c0_i32_0 = arith.constant 0 : i32
    %c0_i32_1 = arith.constant 0 : i32
    return %c0_i32, %c0_i32_0 : i32, i32
  }
  func.func @transform_4(%arg0: i32) -> (i32, i32) {
    %c0_i32 = arith.constant 0 : i32
    %c0_i32_0 = arith.constant 0 : i32
    %c0_i32_1 = arith.constant 0 : i32
    return %c0_i32, %c0_i32_0 : i32, i32
  }
  func.func @transform_5(%arg0: i32) -> (i32, i32, i32) {
    %c0_i32 = arith.constant 0 : i32
    %c0_i32_0 = arith.constant 0 : i32
    %c0_i32_1 = arith.constant 0 : i32
    return %arg0, %c0_i32, %c0_i32_0 : i32, i32, i32
  }
}

</mosaic_0001>

<bundles_post_ra>
// kernel: a_call__.1
= control target key start
LH: loop header
LB: loop body
LE: loop exit
PB: predicated region body
PF: predicated region fallthrough
CT: control target
= control target key end

     0   :  { %10 = vsyncpa [#allocation3], 0  ;;  %s2232_s0 = inlined_call_operand.vmem [shape: bf16[2,18,72], index: 0, kind: input, shape index: {}]   ;;  %s2233_s1 = inlined_call_operand.vmem [shape: bf16[3,72,512], index: 1, kind: input, shape index: {}]   ;;  %s2234_s2 = inlined_call_operand.vmem [shape: f32[1,512], index: 2, kind: input, shape index: {}]   ;;  %s2235_s3 = inlined_call_operand.vmem [shape: f32[512,8], index: 3, kind: input, shape index: {}]   ;;  %s2236_s4 = inlined_call_operand.vmem [shape: f32[1,8], index: 4, kind: input, shape index: {}]   ;;  %s2237_s5 = inlined_call_operand.hbm [shape: f32[2,1,8], index: 5, kind: output, shape index: {}]  }
   0x1   :  { %12 = vsyncpa [#allocation3 + $0x1], 0  ;;  %s1727_s18 = smov 0   ;;  %s1729_s19 = smov 0  }
   0x2   :  { %s1731_s20 = smov 0   ;;  %s1733_s21 = smov 0  }
   0x3 LB: > { %s1748_s22 = sadd.s32 4294967295, %s1693_s21   ;;  %s1234_s23 = sadd.s32 4294967294, %s1693_s21   ;;  %s1693_s21 = sphi %s1733_s21, %s2243_s21   ;;  %s1689_s20 = sphi %s1731_s20, %s2242_s20   ;;  %s1685_s19 = sphi %s1729_s19, %s2241_s19   ;;  %s1681_s18 = sphi %s1727_s18, %s2240_s18  }
   0x4   : > { %s1752_s24 = sadd.s32 1, %s1693_s21   ;;  %s135_s25 = sadd.s32 1, %s1689_s20 }
   0x5   : > { %s132_s26 = ssub.s32 %s1693_s21, %s1752_s24  ;;  %p145_p0 = scmp.ne.s32.totalorder %s1689_s20, %s1685_s19 }
   0x6   : > { %p133_p1 = scmp.eq.s32.totalorder %s132_s26, 0  ;;  %p146_p2 = scmp.eq.s32.totalorder %s1748_s22, 1 }
   0x7   : > { %p151_p3 = scmp.ne.s32.totalorder %s1685_s19, %s1681_s18  ;;  %p152_p4 = scmp.eq.s32.totalorder %s1234_s23, 1 }
   0x8   : > { %s1763_s27 = scalar_select %p133_p1, %s1689_s20, %s135_s25  }
   0x9   : > { %p1765_p5 = por %p146_p2, %p145_p0  ;;  %p1769_p6 = por %p152_p4, %p151_p3 }
   0xa   : > { %p1237_p7 = scmp.ge.s32.totalorder %s1693_s21, 1  ;;  %p190_p8 = scmp.lt.s32.totalorder %s1693_s21, 3 }
   0xc   : > { %p191_p9 = pnand %p1237_p7, %p190_p8 }
   0xd   : > { %v1544_v0 = vld [vmem:[%s2233_s1 + $0x94] ss:$16 sps:$4 sm:$0xff] (!%p191_p9)   ;;  %v1546_v1 = vld [vmem:[%s2233_s1 + $0x9c] ss:$16 sps:$4 sm:$0xff] (!%p191_p9)   ;;  %v1695_v2 = vmov (!%p191_p9), 0   ;;  %p217_p10 = scmp.lt.s32.totalorder (!%p191_p9), %s1748_s22, 1 }
   0xe   : > { %194 = sbr.rel (%p191_p9) target bundleno = 543 (0x21f), region = 40  ;;  %423 = vmatprep.mubr.bf16.mxu0 (!%p191_p9), %v1695_v2  ;;  %466 = vmatprep.mubr.bf16.mxu1 (!%p191_p9), %v1695_v2  ;;  %v1548_v3 = vld [vmem:[%s2233_s1 + $0x90] ss:$16 sps:$4 sm:$0xff] (!%p191_p9)   ;;  %v1549_v4 = vld [vmem:[%s2233_s1 + $0x98] ss:$16 sps:$4 sm:$0xff] (!%p191_p9)   ;;  %vm378_vm0 = vcmask (!%p191_p9), 1043456  }
   0xf   : > { %391 = vmatprep.subr.bf16.mxu0 (!%p191_p9), %v1544_v0  ;;  %434 = vmatprep.subr.bf16.mxu1 (!%p191_p9), %v1546_v1  ;;  %v1550_v5 = vld [vmem:[%s2233_s1 + $0xb4] ss:$16 sps:$4 sm:$0xff] (!%p191_p9)   ;;  %v1552_v6 = vld [vmem:[%s2233_s1 + $0xbc] ss:$16 sps:$4 sm:$0xff] (!%p191_p9)   ;;  %v1554_v7 = vld [vmem:[%s2233_s1 + $0xb0] ss:$16 sps:$4 sm:$0xff] (!%p191_p9)  }
  0x10   : > { %392 = vmatpush1.bf16.msra.mxu0 (!%p191_p9), %v1548_v3  ;;  %435 = vmatpush1.bf16.msra.mxu1 (!%p191_p9), %v1549_v4  ;;  %v1555_v8 = vld [vmem:[%s2233_s1 + $0xb8] ss:$16 sps:$4 sm:$0xff] (!%p191_p9)   ;;  %v1556_v9 = vld [vmem:[%s2233_s1 + $0xd4] ss:$16 sps:$4 sm:$0xff] (!%p191_p9)   ;;  %v1558_v10 = vld [vmem:[%s2233_s1 + $0xdc] ss:$16 sps:$4 sm:$0xff] (!%p191_p9)  }
  0x11   : > { %393 = vmatprep.subr.bf16.mxu0 (!%p191_p9), %v1550_v5  ;;  %436 = vmatprep.subr.bf16.mxu1 (!%p191_p9), %v1552_v6  ;;  %v1560_v11 = vld [vmem:[%s2233_s1 + $0xd0] ss:$16 sps:$4 sm:$0xff] (!%p191_p9)   ;;  %v1561_v12 = vld [vmem:[%s2233_s1 + $0xd8] ss:$16 sps:$4 sm:$0xff] (!%p191_p9)   ;;  %v1562_v13 = vld [vmem:[%s2233_s1 + $0xf4] ss:$16 sps:$4 sm:$0xff] (!%p191_p9)  }
  0x12   : > { %v1564_v14 = vld [vmem:[%s2233_s1 + $0xfc] ss:$16 sps:$4 sm:$0xff] (!%p191_p9)   ;;  %v1255_v15 = vld [vmem:[%s2233_s1 + $0x110] sm:$0xff] (!%p191_p9)  ;;  %v1567_v18 = vld [vmem:[%s2233_s1 + $0xf8] ss:$16 sps:$4 sm:$0xff] (!%p191_p9)   ;;  %vm374_vm2 = vcmask (!%p191_p9), 588800  }
  0x13   : > { %v1256_v16 = vld [vmem:[%s2233_s1 + $0x118] sm:$0xff] (!%p191_p9)  ;;  %v1566_v17 = vld [vmem:[%s2233_s1 + $0xf0] ss:$16 sps:$4 sm:$0xff] (!%p191_p9)   ;;  %v1275_v19 = vcombine.low (!%p191_p9), %v1255_v15, %v1255_v15  ;;  %v1276_v20 = vcombine.high (!%p191_p9), %v1255_v15, %v1255_v15  ;;  %v1574_v28 = vld [vmem:[%s2233_s1 + $0x4] ss:$16 sps:$4 sm:$0xff] (!%p191_p9)   ;;  %vm690_vm3 = vcmask (!%p191_p9), 1046528  }
  0x14   : > { %394 = vmatpush1.bf16.msra.mxu0 (!%p191_p9), %v1554_v7  ;;  %437 = vmatpush1.bf16.msra.mxu1 (!%p191_p9), %v1555_v8  ;;  %v1278_v21 = vcombine.high (!%p191_p9), %v1256_v16, %v1256_v16  ;;  %v1277_v22 = vcombine.low (!%p191_p9), %v1256_v16, %v1256_v16  ;;  %v1577_v29 = vld [vmem:[%s2233_s1 + $0xc] ss:$16 sps:$4 sm:$0xff] (!%p191_p9)   ;;  %v1572_v36 = vld [vmem:[%s2233_s1] ss:$16 sps:$4 sm:$0xff] (!%p191_p9)   ;;  %vm271_vm1 = vsmask.f32 (!%p191_p9), 7424 }
  0x15   : > { %s218_s15 = scalar_select %p217_p10, %s1748_s22, 1  ;;  %395 = vmatprep.subr.bf16.mxu0 %v1556_v9  ;;  %438 = vmatprep.subr.bf16.mxu1 %v1558_v10  ;;  %v380_v27 = vsel %vm378_vm0, %v1275_v19, 0  ;;  %v1575_v37 = vld [vmem:[%s2233_s1 + $0x8] ss:$16 sps:$4 sm:$0xff]   ;;  %v1582_v39 = vld [vmem:[%s2233_s1 + $0x24] ss:$16 sps:$4 sm:$0xff]  }
  0x16   : > { %v386_v30 = vsel %vm378_vm0, %v1277_v22, 0  ;;  %v1585_v40 = vld [vmem:[%s2233_s1 + $0x2c] ss:$16 sps:$4 sm:$0xff]   ;;  %v1580_v42 = vld [vmem:[%s2233_s1 + $0x20] ss:$16 sps:$4 sm:$0xff]   ;;  %s215_s13 = sand.u32 1, %s1685_s19  }
  0x17   : > { %s1503_s8 = smul.u32 12, %s218_s15  ;;  %v1583_v43 = vld [vmem:[%s2233_s1 + $0x28] ss:$16 sps:$4 sm:$0xff]   ;;  %v1588_v44 = vld [vmem:[%s2233_s1 + $0x44] ss:$16 sps:$4 sm:$0xff]   ;;  %s1350_s16 = sshll.u32 %s1748_s22, 4 }
  0x18   : > { %396 = vmatpush1.bf16.msra.mxu0 %v1560_v11  ;;  %439 = vmatpush1.bf16.msra.mxu1 %v1561_v12  ;;  %v1591_v45 = vld [vmem:[%s2233_s1 + $0x4c] ss:$16 sps:$4 sm:$0xff]   ;;  %v1586_v46 = vld [vmem:[%s2233_s1 + $0x40] ss:$16 sps:$4 sm:$0xff]   ;;  %v1589_v47 = vld [vmem:[%s2233_s1 + $0x48] ss:$16 sps:$4 sm:$0xff]   ;;  %s2190_s26 = scalar_lea.hbm %s2237_s5, %s1350_s16 }
  0x19   : > { %s1830_s10 = scalar_lea.vmem %s2232_s0, %s1503_s8  ;;  %397 = vmatprep.subr.bf16.mxu0 %v1562_v13  ;;  %440 = vmatprep.subr.bf16.mxu1 %v1564_v14  ;;  %v1594_v48 = vld [vmem:[%s2233_s1 + $0x64] ss:$16 sps:$4 sm:$0xff]   ;;  %v1597_v49 = vld [vmem:[%s2233_s1 + $0x6c] ss:$16 sps:$4 sm:$0xff]   ;;  %v1592_v52 = vld [vmem:[%s2233_s1 + $0x60] ss:$16 sps:$4 sm:$0xff]  }
  0x1a   : > { %v223_v23 = vld [vmem:[%s1830_s10] sm:$0xf]  ;;  %v1840_v24 = vld [vmem:[%s1830_s10 + $0x4] sm:$0xf]  ;;  %v242_v51 = vld [vmem:[%s2233_s1 + $0x88] sm:$0xff]  ;;  %s216_s17 = scalar_lea.vmem [#allocation2], %s215_s13 }
  0x1b   : > { %v1843_v25 = vcombine.low %v223_v23, %v1840_v24  ;;  %v1846_v26 = vld [vmem:[%s1830_s10 + $0x8] ss:$0 sps:$4 sm:$0x11]   ;;  %v241_v50 = vld [vmem:[%s2233_s1 + $0x80] sm:$0xff]  ;;  %v1302_v55 = vcombine.high %v242_v51, %v242_v51  ;;  %v1301_v57 = vcombine.low %v242_v51, %v242_v51  ;;  %v1607_v61 = vld [vmem:[%s2233_s1 + $0x12c] ss:$16 sps:$4 sm:$0xff]  }
  0x1c   : > { %398 = vmatpush1.bf16.msra.mxu0 %v1566_v17  ;;  %441 = vmatpush1.bf16.msra.mxu1 %v1567_v18  ;;  %v280_v33 = vshll.u32 %v1846_v26, 16  ;;  %v1595_v53 = vld [vmem:[%s2233_s1 + $0x68] ss:$16 sps:$4 sm:$0xff]   ;;  %v1300_v54 = vcombine.high %v241_v50, %v241_v50  ;;  %v1299_v56 = vcombine.low %v241_v50, %v241_v50  ;;  %v1604_v60 = vld [vmem:[%s2233_s1 + $0x124] ss:$16 sps:$4 sm:$0xff]   ;;  %s1179_s15 = sshll.u32 %s216_s17, 4  ;;  %s2192_s15 = int_to_ptr.vmem [resolvable:$true] %s1179_s15 }
  0x1d   : > { %1279 = vmatprep.subr.msk.bf16.mxu0 %vm378_vm0, %v1276_v20  ;;  %1281 = vmatprep.subr.msk.bf16.mxu1 %vm378_vm0, %v1278_v21  ;;  %v273_v31 = vshrl.u32 %v1843_v25, 16  ;;  %v275_v32 = vshll.u32 %v1843_v25, 16  ;;  %v576_v59 = vsel %vm378_vm0, %v1301_v57, 0  ;;  %v1602_v62 = vld [vmem:[%s2233_s1 + $0x120] ss:$16 sps:$4 sm:$0xff]   ;;  %v1324_v12 = vld [vmem:[%s2233_s1 + $0x1a8] sm:$0xff] }
  0x1e   : > { %v282_v35 = vrot.slane %v280_v33, 1  ;;  %v570_v58 = vsel %vm378_vm0, %v1299_v56, 0  ;;  %v1605_v63 = vld [vmem:[%s2233_s1 + $0x128] ss:$16 sps:$4 sm:$0xff]   ;;  %v1610_v0 = vld [vmem:[%s2233_s1 + $0x144] ss:$16 sps:$4 sm:$0xff]   ;;  %v1345_v17 = vcombine.high %v1324_v12, %v1324_v12  ;;  %v1344_v19 = vcombine.low %v1324_v12, %v1324_v12 }
  0x1f   : > { %v277_v34 = vrot.slane %v275_v32, 1  ;;  %v1613_v1 = vld [vmem:[%s2233_s1 + $0x14c] ss:$16 sps:$4 sm:$0xff]   ;;  %v1608_v3 = vld [vmem:[%s2233_s1 + $0x140] ss:$16 sps:$4 sm:$0xff]   ;;  %vm1164_vm4 = vcmask 57344  }
  0x20   : > { %400 = vmatpush1.bf16.msra.mxu0 %v380_v27  ;;  %443 = vmatpush1.bf16.msra.mxu1 %v386_v30  ;;  %v1611_v4 = vld [vmem:[%s2233_s1 + $0x148] ss:$16 sps:$4 sm:$0xff]   ;;  %v1616_v5 = vld [vmem:[%s2233_s1 + $0x164] ss:$16 sps:$4 sm:$0xff]   ;;  %v1619_v6 = vld [vmem:[%s2233_s1 + $0x16c] ss:$16 sps:$4 sm:$0xff]  }
  0x21   : > { %581 = vmatprep.subr.bf16.mxu0 %v1574_v28  ;;  %624 = vmatprep.subr.bf16.mxu1 %v1577_v29  ;;  %v278_v38 = vor.u32 %v277_v34, %v273_v31  ;;  %v1614_v7 = vld [vmem:[%s2233_s1 + $0x160] ss:$16 sps:$4 sm:$0xff]   ;;  %v1617_v8 = vld [vmem:[%s2233_s1 + $0x168] ss:$16 sps:$4 sm:$0xff]   ;;  %v1622_v9 = vld [vmem:[%s2233_s1 + $0x184] ss:$16 sps:$4 sm:$0xff]  }
  0x22   : > { %v1323_v10 = vld [vmem:[%s2233_s1 + $0x1a0] sm:$0xff]  ;;  %v1623_v14 = vld [vmem:[%s2233_s1 + $0x188] ss:$16 sps:$4 sm:$0xff]   ;;  %v794_v30 = vsel %vm378_vm0, %v1344_v19, 0  ;;  %v977_v34 = vld [vmem:[%s2235_s3 + $0x90] sm:$0xff]  ;;  %s1167_s30 = scalar_lea.sflag [#allocation3], %s215_s13 }
  0x23   : > { %v283_v41 = vsel %vm271_vm1, %v278_v38, %v282_v35  ;;  %v667_v11 = vld [vmem:[%s1830_s10] sm:$0xe]  ;;  %v1343_v15 = vcombine.high %v1323_v10, %v1323_v10  ;;  %v1342_v18 = vcombine.low %v1323_v10, %v1323_v10  ;;  %v976_v21 = vld [vmem:[%s2235_s3 + $0x88] sm:$0xff]  ;;  %v978_v35 = vld [vmem:[%s2235_s3 + $0x98] sm:$0xff]  ;;  %s1631_s6 = scalar_lea.vmem %s2192_s15, 16  ;;  %s1696_s22 = smov [#allocation2]  }
  0x24   : > { %1280 = vmatmul.mubr.msk.bf16.vlgmr.msra.gmra.mrb[0].mxu0 %vm374_vm2, %v283_v41  ;;  %1282 = vmatmul.mubr.msk.bf16.vlgmr.msra.gmra.mrb[0].mxu1 %vm374_vm2, %v283_v41  ;;  %v1620_v13 = vld [vmem:[%s2233_s1 + $0x180] ss:$16 sps:$4 sm:$0xff]   ;;  %v1325_v16 = vcombine.low %v667_v11, %v1840_v24  ;;  %v1008_v23 = vld [vmem:[%s2235_s3 + $0x188] sm:$0xff]  ;;  %p1632_p11 = scmp.ne.s32.totalorder %s2192_s15, %s1631_s6  ;;  %s1635_s7 = sshll.u32 %s1696_s22, 4  ;;  %s1636_s7 = int_to_ptr.vmem [resolvable:$false] %s1635_s7 }
  0x25   : > { %582 = vmatpush1.bf16.msra.mxu0 %v1572_v36  ;;  %625 = vmatpush1.bf16.msra.mxu1 %v1575_v37  ;;  %v975_v20 = vld [vmem:[%s2235_s3 + $0x80] sm:$0xff]  ;;  %v960_v28 = vld [vmem:[%s2235_s3 + $0x8] sm:$0xff]  ;;  %v788_v29 = vsel %vm378_vm0, %v1342_v18, 0  ;;  %v1009_v36 = vld [vmem:[%s2235_s3 + $0x190] sm:$0xff]  ;;  %s1637_s9 = scalar_lea.vmem %s1636_s7, 32  ;;  %p1638_p0 = scmp.lt.s32.totalorder %s2192_s15, %s1636_s7 }
  0x26   : > { %583 = vmatprep.subr.bf16.mxu0 %v1582_v39  ;;  %626 = vmatprep.subr.bf16.mxu1 %v1585_v40  ;;  %v1007_v22 = vld [vmem:[%s2235_s3 + $0x180] sm:$0xff]  ;;  %v691_v24 = vrot.slane %v1325_v16, 1  ;;  %v1423_v31 = vpack.c.bf16 %v976_v21, %v975_v20  ;;  %v992_v33 = vld [vmem:[%s2235_s3 + $0x108] sm:$0xff]  ;;  %v1010_v37 = vld [vmem:[%s2235_s3 + $0x198] sm:$0xff]  ;;  %p1633_p12 = pnand %p1632_p11, %p1765_p5  ;;  %p1639_p1 = scmp.lt.s32.totalorder %s1637_s9, %s1631_s6 }
  0x27   : > { %613 = vmatprep.mubr.bf16.mxu0 %v1695_v2  ;;  %656 = vmatprep.mubr.bf16.mxu1 %v1695_v2  ;;  %v959_v27 = vld [vmem:[%s2235_s3] sm:$0xff]  ;;  %v1455_v32 = vpack.c.bf16 %v1008_v23, %v1007_v22  ;;  %v961_v41 = vld [vmem:[%s2235_s3 + $0x10] sm:$0xff]  ;;  %v1012_v50 = vld [vmem:[%s2235_s3 + $0x1a8] sm:$0xff] }
  0x28   : > { %v1425_v39 = vpack.c.bf16 %v960_v28, %v959_v27  ;;  %v964_v56 = vld [vmem:[%s2235_s3 + $0x28] sm:$0xff]  ;;  %v995_v57 = vld [vmem:[%s2235_s3 + $0x120] sm:$0xff]  ;;  %v985_v21 = vld [vmem:[%s2235_s3 + $0xd0] sm:$0xff]  ;;  %p1634_p13 = pneg %p1633_p12  ;;  %p1640_p2 = por %p1639_p1, %p1638_p0 }
  0x29   : > { %584 = vmatpush1.bf16.msra.mxu0 %v1580_v42  ;;  %627 = vmatpush1.bf16.msra.mxu1 %v1583_v43  ;;  %v962_v42 = vld [vmem:[%s2235_s3 + $0x18] sm:$0xff]  ;;  %v1427_v43 = vpack.c.bf16 %v978_v35, %v977_v34  ;;  %v984_v10 = vld [vmem:[%s2235_s3 + $0xc8] sm:$0xff]  ;;  %v1015_v11 = vld [vmem:[%s2235_s3 + $0x1c0] sm:$0xff] }
  0x2a   : > { %585 = vmatprep.subr.bf16.mxu0 %v1588_v44  ;;  %628 = vmatprep.subr.bf16.mxu1 %v1591_v45  ;;  %v1459_v44 = vpack.c.bf16 %v1010_v37, %v1009_v36  ;;  %v993_v45 = vld [vmem:[%s2235_s3 + $0x110] sm:$0xff]  ;;  %v1429_v51 = vpack.c.bf16 %v962_v42, %v961_v41  ;;  %v999_v18 = vld [vmem:[%s2235_s3 + $0x140] sm:$0xff]  ;;  %v1000_v19 = vld [vmem:[%s2235_s3 + $0x148] sm:$0xff]  ;;  %p1641_p3 = pnand %p1640_p2, %p1634_p13 }
  0x2b   : > { %v1473_v20 = vpack.c.bf16 %v1000_v19, %v999_v18  ;;  %v986_v22 = vld [vmem:[%s2235_s3 + $0xd8] sm:$0xff]  ;;  %v1017_v23 = vld [vmem:[%s2235_s3 + $0x1d0] sm:$0xff]  ;;  %v988_v34 = vld [vmem:[%s2235_s3 + $0xe8] sm:$0xff] }
  0x2c   : > { %v969_v27 = vld [vmem:[%s2235_s3 + $0x50] sm:$0xff]  ;;  %v970_v28 = vld [vmem:[%s2235_s3 + $0x58] sm:$0xff]  ;;  %v1019_v35 = vld [vmem:[%s2235_s3 + $0x1e0] sm:$0xff] }
  0x2d   : > { %586 = vmatpush1.bf16.msra.mxu0 %v1586_v46  ;;  %629 = vmatpush1.bf16.msra.mxu1 %v1589_v47  ;;  %v994_v46 = vld [vmem:[%s2235_s3 + $0x118] sm:$0xff]  ;;  %v979_v47 = vld [vmem:[%s2235_s3 + $0xa0] sm:$0xff]  ;;  %v1020_v37 = vld [vmem:[%s2235_s3 + $0x1e8] sm:$0xff] }
  0x2e   : > { %587 = vmatprep.subr.bf16.mxu0 %v1594_v48  ;;  %630 = vmatprep.subr.bf16.mxu1 %v1597_v49  ;;  %v980_v48 = vld [vmem:[%s2235_s3 + $0xa8] sm:$0xff]  ;;  %v1011_v49 = vld [vmem:[%s2235_s3 + $0x1a0] sm:$0xff] }
  0x2f   : > { %v1003_v42 = vld [vmem:[%s2235_s3 + $0x160] sm:$0xff] }
  0x31   : > { %588 = vmatpush1.bf16.msra.mxu0 %v1592_v52  ;;  %631 = vmatpush1.bf16.msra.mxu1 %v1595_v53  ;;  %v1461_v52 = vpack.c.bf16 %v994_v46, %v993_v45  ;;  %v1431_v53 = vpack.c.bf16 %v980_v48, %v979_v47  ;;  %v989_v45 = vld [vmem:[%s2235_s3 + $0xf0] sm:$0xff]  ;;  %v990_v46 = vld [vmem:[%s2235_s3 + $0xf8] sm:$0xff] }
  0x32   : > { %1303 = vmatprep.subr.msk.bf16.mxu0 %vm378_vm0, %v1300_v54  ;;  %1305 = vmatprep.subr.msk.bf16.mxu1 %vm378_vm0, %v1302_v55  ;;  %v1463_v54 = vpack.c.bf16 %v1012_v50, %v1011_v49  ;;  %v963_v55 = vld [vmem:[%s2235_s3 + $0x20] sm:$0xff]  ;;  %v1021_v47 = vld [vmem:[%s2235_s3 + $0x1f0] sm:$0xff]  ;;  %v1451_v48 = vpack.c.bf16 %v990_v46, %v989_v45  ;;  %v1022_v49 = vld [vmem:[%s2235_s3 + $0x1f8] sm:$0xff] }
  0x33   : > { %v973_v50 = vld [vmem:[%s2235_s3 + $0x70] sm:$0xff] }
  0x35   : > { %590 = vmatpush1.bf16.msra.mxu0 %v570_v58  ;;  %633 = vmatpush1.bf16.msra.mxu1 %v576_v59  ;;  %v1433_v58 = vpack.c.bf16 %v964_v56, %v963_v55  ;;  %v996_v59 = vld [vmem:[%s2235_s3 + $0x128] sm:$0xff]  ;;  %v1006_v55 = vld [vmem:[%s2235_s3 + $0x178] sm:$0xff] }
  0x36   : > { %799 = vmatprep.subr.bf16.mxu0 %v1604_v60  ;;  %842 = vmatprep.subr.bf16.mxu1 %v1607_v61  ;;  %v1465_v60 = vpack.c.bf16 %v996_v59, %v995_v57  ;;  %v981_v61 = vld [vmem:[%s2235_s3 + $0xb0] sm:$0xff]  ;;  %v895_v57 = vlaneseq }
  0x38   : > { %1304 = vmatmul.mubr.msk.bf16.vlgmr.msra.gmra.mrb[0].mxu0 %vm374_vm2, %v1843_v25  ;;  %1306 = vmatmul.mubr.msk.bf16.vlgmr.msra.gmra.mrb[0].mxu1 %vm374_vm2, %v1843_v25  ;;  %v692_v25 = vrot.slane %v1846_v26, 1  ;;  %v991_v26 = vld [vmem:[%s2235_s3 + $0x100] sm:$0xff] }
  0x39   : > { %800 = vmatpush1.bf16.msra.mxu0 %v1602_v62  ;;  %843 = vmatpush1.bf16.msra.mxu1 %v1605_v63  ;;  %v1457_v40 = vpack.c.bf16 %v992_v33, %v991_v26  ;;  %v982_v62 = vld [vmem:[%s2235_s3 + $0xb8] sm:$0xff]  ;;  %v1013_v63 = vld [vmem:[%s2235_s3 + $0x1b0] sm:$0xff]  ;;  %v987_v33 = vld [vmem:[%s2235_s3 + $0xe0] sm:$0xff] }
  0x3a   : > { %801 = vmatprep.subr.bf16.mxu0 %v1610_v0  ;;  %844 = vmatprep.subr.bf16.mxu1 %v1613_v1  ;;  %v693_v38 = vsel %vm690_vm3, %v691_v24, %v692_v25  ;;  %v1435_v0 = vpack.c.bf16 %v982_v62, %v981_v61  ;;  %v1014_v1 = vld [vmem:[%s2235_s3 + $0x1b8] sm:$0xff]  ;;  %v1443_v24 = vpack.c.bf16 %v986_v22, %v985_v21  ;;  %v893_v61 = vld [vmem:[%s2234_s2] sm:$0xf] }
  0x3b   : > { %831 = vmatprep.mubr.bf16.mxu0 %v1695_v2  ;;  %874 = vmatprep.mubr.bf16.mxu1 %v1695_v2  ;;  %v1625_v2 = vld [vmem:[%s2233_s1 + $0x18c] ss:$16 sps:$4 sm:$0xff]   ;;  %v1447_v36 = vpack.c.bf16 %v988_v34, %v987_v33 }
  0x3c   : > { %v1018_v25 = vld [vmem:[%s2235_s3 + $0x1d8] sm:$0xff] }
  0x3d   : > { %802 = vmatpush1.bf16.msra.mxu0 %v1608_v3  ;;  %845 = vmatpush1.bf16.msra.mxu1 %v1611_v4  ;;  %v965_v3 = vld [vmem:[%s2235_s3 + $0x30] sm:$0xff]  ;;  %v966_v4 = vld [vmem:[%s2235_s3 + $0x38] sm:$0xff] }
  0x3e   : > { %803 = vmatprep.subr.bf16.mxu0 %v1616_v5  ;;  %846 = vmatprep.subr.bf16.mxu1 %v1619_v6  ;;  %v1467_v5 = vpack.c.bf16 %v1014_v1, %v1013_v63  ;;  %v1437_v6 = vpack.c.bf16 %v966_v4, %v965_v3 }
  0x41   : > { %804 = vmatpush1.bf16.msra.mxu0 %v1614_v7  ;;  %847 = vmatpush1.bf16.msra.mxu1 %v1617_v8  ;;  %v997_v7 = vld [vmem:[%s2235_s3 + $0x130] sm:$0xff]  ;;  %v998_v8 = vld [vmem:[%s2235_s3 + $0x138] sm:$0xff] }
  0x42   : > { %805 = vmatprep.subr.bf16.mxu0 %v1622_v9  ;;  %848 = vmatprep.subr.bf16.mxu1 %v1625_v2  ;;  %v1469_v9 = vpack.c.bf16 %v998_v8, %v997_v7  ;;  %v983_v2 = vld [vmem:[%s2235_s3 + $0xc0] sm:$0xff] }
  0x43   : > { %v1439_v12 = vpack.c.bf16 %v984_v10, %v983_v2 }
  0x45   : > { %806 = vmatpush1.bf16.msra.mxu0 %v1620_v13  ;;  %849 = vmatpush1.bf16.msra.mxu1 %v1623_v14  ;;  %v1016_v13 = vld [vmem:[%s2235_s3 + $0x1c8] sm:$0xff]  ;;  %v967_v14 = vld [vmem:[%s2235_s3 + $0x40] sm:$0xff] }
  0x46   : > { %1346 = vmatprep.subr.msk.bf16.mxu0 %vm378_vm0, %v1343_v15  ;;  %1348 = vmatprep.subr.msk.bf16.mxu1 %vm378_vm0, %v1345_v17  ;;  %v968_v15 = vld [vmem:[%s2235_s3 + $0x48] sm:$0xff]  ;;  %v1471_v16 = vpack.c.bf16 %v1016_v13, %v1015_v11 }
  0x47   : > { %v1441_v17 = vpack.c.bf16 %v968_v15, %v967_v14 }
  0x49   : > { %808 = vmatpush1.bf16.msra.mxu0 %v788_v29  ;;  %851 = vmatpush1.bf16.msra.mxu1 %v794_v30  ;;  %v1475_v29 = vpack.c.bf16 %v1018_v25, %v1017_v23  ;;  %v1445_v30 = vpack.c.bf16 %v970_v28, %v969_v27 }
  0x4a   : > { %1424 = vmatprep.subr.bf16.mxu0 %v1423_v31  ;;  %1456 = vmatprep.subr.bf16.mxu1 %v1455_v32  ;;  %v1001_v31 = vld [vmem:[%s2235_s3 + $0x150] sm:$0xff]  ;;  %v1002_v32 = vld [vmem:[%s2235_s3 + $0x158] sm:$0xff] }
  0x4b   : > { %v1477_v26 = vpack.c.bf16 %v1002_v32, %v1001_v31 }
  0x4c   : > { %1347 = vmatmul.mubr.msk.bf16.vlgmr.msra.gmra.mrb[0].mxu0 %vm374_vm2, %v693_v38  ;;  %1349 = vmatmul.mubr.msk.bf16.vlgmr.msra.gmra.mrb[0].mxu1 %vm374_vm2, %v693_v38  ;;  %v971_v38 = vld [vmem:[%s2235_s3 + $0x60] sm:$0xff] }
  0x4d   : > { %1426 = vmatpush3.bf16.msra.mxu0 %v1425_v39  ;;  %1458 = vmatpush3.bf16.msra.mxu1 %v1457_v40  ;;  %v972_v39 = vld [vmem:[%s2235_s3 + $0x68] sm:$0xff]  ;;  %v1479_v40 = vpack.c.bf16 %v1020_v37, %v1019_v35 }
  0x4e   : > { %1428 = vmatprep.subr.bf16.mxu0 %v1427_v43  ;;  %1460 = vmatprep.subr.bf16.mxu1 %v1459_v44  ;;  %v1449_v41 = vpack.c.bf16 %v972_v39, %v971_v38  ;;  %v1004_v43 = vld [vmem:[%s2235_s3 + $0x168] sm:$0xff] }
  0x4f   : > { %v1481_v44 = vpack.c.bf16 %v1004_v43, %v1003_v42 }
  0x51   : > { %1430 = vmatpush3.bf16.msra.mxu0 %v1429_v51  ;;  %1462 = vmatpush3.bf16.msra.mxu1 %v1461_v52  ;;  %v974_v51 = vld [vmem:[%s2235_s3 + $0x78] sm:$0xff]  ;;  %v1483_v52 = vpack.c.bf16 %v1022_v49, %v1021_v47 }
  0x52   : > { %1432 = vmatprep.subr.bf16.mxu0 %v1431_v53  ;;  %1464 = vmatprep.subr.bf16.mxu1 %v1463_v54  ;;  %v1453_v53 = vpack.c.bf16 %v974_v51, %v973_v50  ;;  %v1005_v54 = vld [vmem:[%s2235_s3 + $0x170] sm:$0xff] }
  0x53   : > { %v1485_v56 = vpack.c.bf16 %v1006_v55, %v1005_v54 }
  0x55   : > { %1434 = vmatpush3.bf16.msra.mxu0 %v1433_v58  ;;  %1466 = vmatpush3.bf16.msra.mxu1 %v1465_v60  ;;  %v896_v58 = vshrl.u32 %v895_v57, 7 }
  0x56   : > { %1436 = vmatprep.subr.bf16.mxu0 %v1435_v0  ;;  %1468 = vmatprep.subr.bf16.mxu1 %v1467_v5 }
  0x57   : > { %v897_v59 = vsub.s32 0, %v896_v58  ;;  %v905_v60 = vsub.s32 2, %v896_v58  ;;  %v901_v62 = vsub.s32 1, %v896_v58  ;;  %v909_v63 = vsub.s32 3, %v896_v58  ;;  %v1023_v58 = vld [vmem:[%s2236_s4] sm:$0x1] }
  0x59   : > { %1438 = vmatpush3.bf16.msra.mxu0 %v1437_v6  ;;  %1470 = vmatpush3.bf16.msra.mxu1 %v1469_v9  ;;  %v898_v0 = vrot.slane %v893_v61, %v897_v59  ;;  %v906_v1 = vrot.slane %v893_v61, %v905_v60  ;;  %v902_v3 = vrot.slane %v893_v61, %v901_v62 }
  0x5a   : > { %1440 = vmatprep.subr.bf16.mxu0 %v1439_v12  ;;  %1472 = vmatprep.subr.bf16.mxu1 %v1471_v16  ;;  %v910_v4 = vrot.slane %v893_v61, %v909_v63 }
  0x5d   : > { %1442 = vmatpush3.bf16.msra.mxu0 %v1441_v17  ;;  %1474 = vmatpush3.bf16.msra.mxu1 %v1473_v20 }
  0x5e   : > { %1444 = vmatprep.subr.bf16.mxu0 %v1443_v24  ;;  %1476 = vmatprep.subr.bf16.mxu1 %v1475_v29 }
  0x61   : > { %1446 = vmatpush3.bf16.msra.mxu0 %v1445_v30  ;;  %1478 = vmatpush3.bf16.msra.mxu1 %v1477_v26 }
  0x62   : > { %1448 = vmatprep.subr.bf16.mxu0 %v1447_v36  ;;  %1480 = vmatprep.subr.bf16.mxu1 %v1479_v40 }
  0x65   : > { %1450 = vmatpush3.bf16.msra.mxu0 %v1449_v41  ;;  %1482 = vmatpush3.bf16.msra.mxu1 %v1481_v44 }
  0x66   : > { %1452 = vmatprep.subr.bf16.mxu0 %v1451_v48  ;;  %1484 = vmatprep.subr.bf16.mxu1 %v1483_v52 }
  0x69   : > { %1454 = vmatpush3.bf16.msra.mxu0 %v1453_v53  ;;  %1486 = vmatpush3.bf16.msra.mxu1 %v1485_v56 }
 0x11f   : > { %v833_v5 = vpop.f32.mrb[0].mxu0  ;;  %v876_v6 = vpop.f32.mrb[0].mxu1 }
 0x120   : > { %v915_v7 = vadd.f32 %v898_v0, %v833_v5  ;;  %v917_v8 = vadd.f32 %v906_v1, %v876_v6  ;;  %v835_v9 = vpop.f32.mrb[1].mxu0  ;;  %v878_v2 = vpop.f32.mrb[1].mxu1 }
 0x121   : > { %v916_v10 = vadd.f32 %v902_v3, %v835_v9  ;;  %v918_v11 = vadd.f32 %v910_v4, %v878_v2  ;;  %v837_v12 = vpop.f32.mrb[2].mxu0  ;;  %v880_v13 = vpop.f32.mrb[2].mxu1 }
 0x122   : > { %v919_v14 = vadd.f32 %v898_v0, %v837_v12  ;;  %v921_v15 = vadd.f32 %v906_v1, %v880_v13  ;;  %v839_v16 = vpop.f32.mrb[3].mxu0  ;;  %v882_v17 = vpop.f32.mrb[3].mxu1  ;;  %v923_v20 = vmax.f32 %v915_v7, 0.0  ;;  %v925_v21 = vmax.f32 %v917_v8, 0.0 }
 0x123   : > { %v920_v18 = vadd.f32 %v902_v3, %v839_v16  ;;  %v922_v19 = vadd.f32 %v910_v4, %v882_v17  ;;  %v924_v24 = vmax.f32 %v916_v10, 0.0  ;;  %v926_v25 = vmax.f32 %v918_v11, 0.0 }
 0x124   : > { %v927_v22 = vmax.f32 %v919_v14, 0.0  ;;  %v929_v23 = vmax.f32 %v921_v15, 0.0 }
 0x125   : > { %v928_v27 = vmax.f32 %v920_v18, 0.0  ;;  %v930_v28 = vmax.f32 %v922_v19, 0.0 }
 0x126   : > { %v931_v29 = vadd.f32 %v927_v22, %v923_v20  ;;  %v945_v30 = vadd.f32 %v929_v23, %v925_v21 }
 0x127   : > { %v938_v31 = vadd.f32 %v928_v27, %v924_v24  ;;  %v952_v32 = vadd.f32 %v930_v28, %v926_v25 }
 0x128   : > { %v932_v26 = vrot.slane %v931_v29, 4  ;;  %v946_v33 = vrot.slane %v945_v30, 4 }
 0x129   : > { %v939_v34 = vrot.slane %v938_v31, 4  ;;  %v953_v35 = vrot.slane %v952_v32, 4 }
 0x12a   : > { %v933_v36 = vadd.f32 %v932_v26, %v931_v29  ;;  %v947_v37 = vadd.f32 %v946_v33, %v945_v30 }
 0x12b   : > { %v940_v38 = vadd.f32 %v939_v34, %v938_v31  ;;  %v954_v39 = vadd.f32 %v953_v35, %v952_v32 }
 0x12c   : > { %v934_v40 = vrot.slane %v933_v36, 2  ;;  %v948_v41 = vrot.slane %v947_v37, 2 }
 0x12d   : > { %v941_v42 = vrot.slane %v940_v38, 2  ;;  %v955_v43 = vrot.slane %v954_v39, 2 }
 0x12e   : > { %v935_v44 = vadd.f32 %v934_v40, %v933_v36  ;;  %v949_v45 = vadd.f32 %v948_v41, %v947_v37 }
 0x12f   : > { %v942_v46 = vadd.f32 %v941_v42, %v940_v38  ;;  %v956_v47 = vadd.f32 %v955_v43, %v954_v39 }
 0x130   : > { %v936_v48 = vrot.slane %v935_v44, 1  ;;  %v950_v49 = vrot.slane %v949_v45, 1 }
 0x131   : > { %v943_v50 = vrot.slane %v942_v46, 1  ;;  %v957_v51 = vrot.slane %v956_v47, 1 }
 0x132   : > { %v937_v54 = vadd.f32 %v936_v48, %v935_v44  ;;  %v951_v55 = vadd.f32 %v950_v49, %v949_v45 }
 0x133   : > { %v944_v52 = vadd.f32 %v943_v50, %v942_v46  ;;  %v958_v53 = vadd.f32 %v957_v51, %v956_v47 }
 0x135   : > { %1088 = vmatprep.mubr.f32.mxu0 %v944_v52  ;;  %1158 = vmatprep.mubr.f32.mxu1 %v958_v53 }
 0x136   : > { %1089 = vmatmul.mubr.f32.vlgmr.msra.gmra.mrb[4].mxu0 %v937_v54  ;;  %1159 = vmatmul.mubr.f32.vlgmr.msra.gmra.mrb[4].mxu1 %v951_v55 }
 0x209   : > { %v1385_v56 = vpop.f32.mrb[4].mxu0  ;;  %v1420_v57 = vpop.f32.mrb[4].mxu1 }
 0x20a   : > { %v1386_v59 = vpop.f32.mrb[5].mxu0  ;;  %v1421_v60 = vpop.f32.mrb[5].mxu1 }
 0x20b   : > { %v1387_v61 = vadd.f32 %v1386_v59, %v1385_v56  ;;  %v1422_v62 = vadd.f32 %v1421_v60, %v1420_v57 }
 0x20d   : > { %v1091_v63 = vadd.f32 %v1387_v61, %v1023_v58 }
 0x20f   : > { %v1161_v0 = vadd.f32 %v1422_v62, %v1091_v63 }
 0x211   : > { %1165 = vst.msk [vmem:[%s216_s17] sm:$0x1] %vm1164_vm4, %v1161_v0 }
 0x212   : > { %1644 = shalt.err (!%p1641_p3)
}
 0x213   : > { %s1645_s11 = scalar_lea.hbm %s2190_s26, 16  ;;  %s1649_s13 = scalar_lea.hbm %s2237_s5, 32 }
 0x214   : > { %p1646_p4 = scmp.ne.s32.totalorder %s2190_s26, %s1645_s11  ;;  %p1650_p9 = scmp.lt.u32.totalorder %s2190_s26, %s2237_s5 }
 0x215   : > { %p1651_p10 = scmp.lt.u32.totalorder %s1649_s13, %s1645_s11  ;;  %p1653_p12 = scmp.lt.u32.totalorder %s1645_s11, %s2190_s26 }
 0x216   : > { %p1647_p7 = pnand %p1646_p4, %p1765_p5 }
 0x217   : > { %p1652_p11 = por %p1651_p10, %p1650_p9 }
 0x218   : > { %p1648_p8 = pneg %p1647_p7 }
 0x219   : > { %p1654_p13 = por %p1653_p12, %p1652_p11 }
 0x21b   : > { %p1655_p0 = pnand %p1654_p13, %p1648_p8 }
 0x21d   : > { %1658 = shalt.err (!%p1655_p0)
}
 0x21e   : > { %1504 = dma.vmem_to_hbm [thread:$0]  (%p1765_p5), %s2192_s15, 16, %s2190_s26, %s1167_s30  }
 0x21f PF: > { %p1510_p1 = scmp.ge.s32.totalorder %s1693_s21, 2  ;;  %s1191_s16 = sand.u32 1, %s1681_s18  }
 0x220   : > { %s1192_s17 = scalar_lea.sflag [#allocation3], %s1191_s16 }
 0x221   : > { %p1507_p2 = pnand %p1510_p1, %p1769_p6 }
 0x223   : > { %1676 = dma.done.wait (!%p1507_p2), %s1192_s17, 16  }
 0x224   : > { %1678 = vsyncadd (!%p1507_p2), %s1192_s17, 4294967280  ;;  %p15_p3 = scmp.ge.s32.totalorder %s1752_s24, 4   ;;  %s2240_s18 = smov %s1685_s19 }
 0x225   : > { %s2241_s19 = smov %s1689_s20  ;;  %s2242_s20 = smov %s1763_s27 }
 0x226   : > { %s2243_s21 = smov %s1752_s24  ;;  %17 = sbr.rel (!%p15_p3) target bundleno = 3 (0x3), region = 77 }
 0x22d   :  { %1196 = vsyncpa [#allocation3], 1 }
 0x22e   :  { %1198 = vsyncpa [#allocation3 + $0x1], 1 }

</bundles_post_ra>
